<compile_context>
chip_gen: v5e
topology: v5e:2x2
jax: 0.10.0
libtpu: 0.0.40
codegen_flags: <defaults>
</compile_context>

<pallas_src>
import jax
import jax.numpy as jnp
from jax.experimental import pallas as pl
from jax.experimental.pallas import tpu as pltpu


def _round_up(x: int, m: int) -> int:
    return (x + m - 1) // m * m


def _pick_tile(n_p: int, max_tile: int) -> int:
    """Largest multiple of 128 that divides n_p and is <= max_tile."""
    t = min(max_tile, n_p)
    while n_p % t:
        t -= 128
    return t


# ---------------------------------------------------------------------------
# Fused kernel:  out = PReLU( (adj @ seq) @ W^T + bias )
# grid = (B, N/tm, N/tk); K axis last ('arbitrary'); f32 (tm, in_ft) scratch.
# ---------------------------------------------------------------------------
def _gcn_kernel(adj_ref, seq_ref, w_ref, bias_ref, alpha_ref, out_ref, acc_ref):
    k = pl.program_id(2)

    @pl.when(k == 0)
    def _init():
        acc_ref[...] = jnp.zeros_like(acc_ref)

    # (tm, tk) @ (tk, in_ft) -> (tm, in_ft); f32 accumulation on the MXU.
    acc_ref[...] += jnp.dot(
        adj_ref[0], seq_ref[0], preferred_element_type=jnp.float32
    )

    @pl.when(k == pl.num_programs(2) - 1)
    def _finalize():
        # Small epilogue matmul (tm, in_ft) @ (in_ft, out_ft_p) in f32,
        # then bias + PReLU, single lane-dense store.
        out = jnp.dot(
            acc_ref[...], w_ref[...], preferred_element_type=jnp.float32
        ) + bias_ref[...]
        alpha = alpha_ref[0, 0]
        out = jnp.where(out > 0, out, alpha * out)
        out_ref[0] = out.astype(out_ref.dtype)


def gcn_forward(seq, adj, weight, bias, alpha, *,
                compute_dtype=jnp.bfloat16, row_tile=1024):
    """seq: (B, N, in_ft), adj: (B, N, N), weight: (out_ft, in_ft),
    bias: (out_ft,), alpha: scalar -> (B, N, out_ft).

    compute_dtype: dtype for the streamed adj/seq operands (default bf16 --
    MXU-native on v5e/v6e/v7x); W, bias and accumulation stay f32.
    Pass jnp.float32 for bit-accurate results.  row_tile: max tile edge,
    multiple of 128.
    """
    assert row_tile % 128 == 0 and row_tile >= 128
    B, N, in_ft = seq.shape
    out_ft = weight.shape[0]
    out_dtype = seq.dtype
    in_dtype = jnp.dtype(compute_dtype if compute_dtype is not None
                         else seq.dtype)

    # Lane-dense padding: out_ft and N up to multiples of 128.
    out_ft_p = _round_up(out_ft, 128)
    n_p = _round_up(N, 128)
    tk = _pick_tile(n_p, row_tile)
    tm = tk
    # v7x has 2 TensorCores sharded over the parallel grid axes; keep >= 2
    # parallel tiles when possible.
    if B * (n_p // tm) < 2 and n_p >= 256:
        tm = n_p // 2          # multiple of 64 -> valid sublane tile, divides n_p

    seq_p = jnp.pad(seq, ((0, 0), (0, n_p - N), (0, 0))).astype(in_dtype)
    adj_p = jnp.pad(adj, ((0, 0), (0, n_p - N), (0, n_p - N))).astype(in_dtype)
    w_p = jnp.pad(weight.T.astype(jnp.float32),
                  ((0, 0), (0, out_ft_p - out_ft)))           # (in_ft, out_ft_p)
    bias_p = jnp.pad(bias.astype(jnp.float32),
                     (0, out_ft_p - out_ft)).reshape(1, out_ft_p)
    alpha_sm = jnp.asarray(alpha, jnp.float32).reshape(1, 1)

    grid = (B, n_p // tm, n_p // tk)

    in_bytes = in_dtype.itemsize
    out_bytes = jnp.dtype(out_dtype).itemsize
    tile_vmem = (2 * (tm * tk * in_bytes
                      + tk * in_ft * in_bytes
                      + tm * out_ft_p * out_bytes)
                 + in_ft * out_ft_p * 4 + out_ft_p * 4 + tm * in_ft * 4)
    # Cap below v7x's 64 MiB per-TC VMEM (v5e/v6e have 128 MiB).
    vmem_cap = 48 * 1024 * 1024
    try:
        vmem_cap = min(vmem_cap,
                       int(0.75 * pltpu.get_tpu_info().vmem_capacity_bytes))
    except Exception:
        pass
    vmem_limit = int(min(vmem_cap, max(16 * 1024 * 1024, 2 * tile_vmem)))

    cost = pl.CostEstimate(
        flops=int(2 * B * n_p * n_p * in_ft
                  + 2 * B * n_p * in_ft * out_ft_p),
        transcendentals=0,
        bytes_accessed=int(B * n_p * n_p * in_bytes                     # adj
                           + B * (n_p // tm) * n_p * in_ft * in_bytes   # seq re-reads
                           + B * n_p * out_ft_p * out_bytes),           # out
    )

    out_p = pl.pallas_call(
        _gcn_kernel,
        out_shape=jax.ShapeDtypeStruct((B, n_p, out_ft_p), out_dtype),
        grid_spec=pltpu.PrefetchScalarGridSpec(
            num_scalar_prefetch=0,
            grid=grid,
            in_specs=[
                pl.BlockSpec((1, tm, tk), lambda b, i, k: (b, i, k)),
                pl.BlockSpec((1, tk, in_ft), lambda b, i, k: (b, k, 0)),
                pl.BlockSpec((in_ft, out_ft_p), lambda b, i, k: (0, 0)),
                pl.BlockSpec((1, out_ft_p), lambda b, i, k: (0, 0)),
                pl.BlockSpec((1, 1), lambda b, i, k: (0, 0),
                             memory_space=pltpu.MemorySpace.SMEM),
            ],
            out_specs=pl.BlockSpec((1, tm, out_ft_p),
                                   lambda b, i, k: (b, i, 0)),
            scratch_shapes=[pltpu.VMEM((tm, in_ft), jnp.float32)],
        ),
        compiler_params=pltpu.CompilerParams(
            dimension_semantics=("parallel", "parallel", "arbitrary"),
            vmem_limit_bytes=vmem_limit),
        cost_estimate=cost,
    )(adj_p, seq_p, w_p, bias_p, alpha_sm)

    return out_p[:, :N, :out_ft]


def _reference(seq, adj, weight, bias, alpha):
    fts = jnp.einsum("bni,oi->bno", seq, weight)
    out = jnp.einsum("bnm,bmo->bno", adj, fts) + bias
    return jnp.where(out > 0, out, alpha * out)


if __name__ == "__main__":
    key = jax.random.PRNGKey(0)
    k_seq, k_adj, k_w, k_seq2, k_adj2 = jax.random.split(key, 5)

    # Small shapes consistent with the module's forward.
    B, N, in_ft, out_ft = 2, 8, 16, 32
    seq = jax.random.normal(k_seq, (B, N, in_ft), dtype=jnp.float32)
    adj_raw = jax.random.uniform(k_adj, (B, N, N), dtype=jnp.float32)
    adj = adj_raw / jnp.sum(adj_raw, axis=-1, keepdims=True)

    # Param init mirroring __init__: xavier_uniform_ weight, zero bias,
    # PReLU alpha default 0.25.
    bound = (6.0 / (in_ft + out_ft)) ** 0.5
    weight = jax.random.uniform(k_w, (out_ft, in_ft), dtype=jnp.float32,
                                minval=-bound, maxval=bound)
    bias = jnp.zeros((out_ft,), dtype=jnp.float32)
    alpha = jnp.float32(0.25)

    ref = _reference(seq, adj, weight, bias, alpha)

    # f32 compute path, tight tolerance.
    out = gcn_forward(seq, adj, weight, bias, alpha,
                      compute_dtype=jnp.float32)
    jax.block_until_ready(out)
    assert jnp.allclose(out, ref, atol=1e-4, rtol=1e-4)

    # Second case exercises N/out_ft padding and the multi-tile K
    # accumulation loop (row_tile=128, N=200 -> n_p=256, grid=(B, 2, 2)).
    N2 = 200
    seq2 = jax.random.normal(k_seq2, (B, N2, in_ft), dtype=jnp.float32)
    adj2_raw = jax.random.uniform(k_adj2, (B, N2, N2), dtype=jnp.float32)
    adj2 = adj2_raw / jnp.sum(adj2_raw, axis=-1, keepdims=True)
    ref2 = _reference(seq2, adj2, weight, bias, alpha)

    out2 = gcn_forward(seq2, adj2, weight, bias, alpha,
                       compute_dtype=jnp.float32, row_tile=128)
    jax.block_until_ready(out2)
    assert jnp.allclose(out2, ref2, atol=1e-4, rtol=1e-4)

    # Default bf16 adj/seq path (f32 accumulation + epilogue): looser tol.
    out3 = gcn_forward(seq2, adj2, weight, bias, alpha, row_tile=128)
    jax.block_until_ready(out3)
    assert jnp.allclose(out3, ref2, atol=3e-2, rtol=3e-2)

    print("KERNEL_OK")
</pallas_src>

<mosaic_0001>
module attributes {stable_mosaic.version = 11 : i64} {
  func.func @_gcn_kernel(%arg0: i32, %arg1: i32, %arg2: i32, %arg3: memref<1x128x128xf32, #tpu.memory_space<vmem>>, %arg4: memref<1x128x16xf32, #tpu.memory_space<vmem>>, %arg5: memref<16x128xf32, #tpu.memory_space<vmem>>, %arg6: memref<1x128xf32, #tpu.memory_space<vmem>>, %arg7: memref<1x1xf32, #tpu.memory_space<smem>>, %arg8: memref<1x128x128xf32, #tpu.memory_space<vmem>>, %arg9: memref<128x16xf32, #tpu.memory_space<vmem>>) attributes {dimension_semantics = [#tpu.dimension_semantics<parallel>, #tpu.dimension_semantics<parallel>, #tpu.dimension_semantics<arbitrary>], iteration_bounds = array<i64: 2, 1, 1>, scalar_prefetch = 0 : i64, scratch_operands = 1 : i64, tpu.core_type = #tpu.core_type<tc>, window_params = [{transform_indices = @transform_0, window_bounds = array<i64: 1, 128, 128>}, {transform_indices = @transform_1, window_bounds = array<i64: 1, 128, 16>}, {pipeline_mode = #tpu.pipeline_mode<synchronous>, transform_indices = @transform_2, window_bounds = array<i64: 16, 128>}, {pipeline_mode = #tpu.pipeline_mode<synchronous>, transform_indices = @transform_3, window_bounds = array<i64: 1, 128>}, {transform_indices = @transform_4, window_bounds = array<i64: 1, 1>}, {transform_indices = @transform_5, window_bounds = array<i64: 1, 128, 128>}]} {
    %c0_i32 = arith.constant 0 : i32
    %0 = arith.cmpi eq, %arg2, %c0_i32 : i32
    %1 = arith.extui %0 : i1 to i32
    %c0_i32_0 = arith.constant 0 : i32
    %2 = arith.cmpi ne, %1, %c0_i32_0 : i32
    scf.if %2 {
      %cst_12 = arith.constant 0.000000e+00 : f32
      %14 = vector.broadcast %cst_12 : f32 to vector<128x16xf32>
      %c0_13 = arith.constant 0 : index
      %c0_14 = arith.constant 0 : index
      %15 = vector.load %arg9[%c0_13, %c0_14] : memref<128x16xf32, #tpu.memory_space<vmem>>, vector<128x16xf32>
      tpu.vector_store %arg9[%c0_13, %c0_14], %14 {strides = array<i32>} : memref<128x16xf32, #tpu.memory_space<vmem>>, vector<128x16xf32>,
    } else {
    }
    %c0 = arith.constant 0 : index
    %c0_1 = arith.constant 0 : index
    %3 = vector.load %arg9[%c0, %c0_1] : memref<128x16xf32, #tpu.memory_space<vmem>>, vector<128x16xf32>
    %c0_2 = arith.constant 0 : index
    %c0_3 = arith.constant 0 : index
    %c0_4 = arith.constant 0 : index
    %4 = vector.load %arg3[%c0_2, %c0_3, %c0_4] : memref<1x128x128xf32, #tpu.memory_space<vmem>>, vector<1x128x128xf32>
    %5 = vector.shape_cast %4 : vector<1x128x128xf32> to vector<128x128xf32>
    %c0_5 = arith.constant 0 : index
    %c0_6 = arith.constant 0 : index
    %c0_7 = arith.constant 0 : index
    %6 = vector.load %arg4[%c0_5, %c0_6, %c0_7] : memref<1x128x16xf32, #tpu.memory_space<vmem>>, vector<1x128x16xf32>
    %7 = vector.shape_cast %6 : vector<1x128x16xf32> to vector<128x16xf32>
    %cst = arith.constant dense<0.000000e+00> : vector<128x16xf32>
    %8 = tpu.matmul %5, %7, %cst {dimension_numbers = #tpu.dot_dimension_numbers<[1], [0], [0], [1], [0, 0, 1, 1], [], []>} : vector<128x128xf32>, vector<128x16xf32>, vector<128x16xf32> -> vector<128x16xf32>
    %9 = arith.addf %3, %8 : vector<128x16xf32>
    %c0_8 = arith.constant 0 : index
    %c0_9 = arith.constant 0 : index
    %10 = vector.load %arg9[%c0_8, %c0_9] : memref<128x16xf32, #tpu.memory_space<vmem>>, vector<128x16xf32>
    tpu.vector_store %arg9[%c0_8, %c0_9], %9 {strides = array<i32>} : memref<128x16xf32, #tpu.memory_space<vmem>>, vector<128x16xf32>,
    %c0_i32_10 = arith.constant 0 : i32
    %11 = arith.cmpi eq, %arg2, %c0_i32_10 : i32
    %12 = arith.extui %11 : i1 to i32
    %c0_i32_11 = arith.constant 0 : i32
    %13 = arith.cmpi ne, %12, %c0_i32_11 : i32
    scf.if %13 {
      %c0_12 = arith.constant 0 : index
      %c0_13 = arith.constant 0 : index
      %14 = vector.load %arg9[%c0_12, %c0_13] : memref<128x16xf32, #tpu.memory_space<vmem>>, vector<128x16xf32>
      %c0_14 = arith.constant 0 : index
      %c0_15 = arith.constant 0 : index
      %15 = vector.load %arg5[%c0_14, %c0_15] : memref<16x128xf32, #tpu.memory_space<vmem>>, vector<16x128xf32>
      %cst_16 = arith.constant dense<0.000000e+00> : vector<128x128xf32>
      %16 = tpu.matmul %14, %15, %cst_16 {dimension_numbers = #tpu.dot_dimension_numbers<[1], [0], [0], [1], [0, 0, 1, 1], [], []>} : vector<128x16xf32>, vector<16x128xf32>, vector<128x128xf32> -> vector<128x128xf32>
      %c0_17 = arith.constant 0 : index
      %c0_18 = arith.constant 0 : index
      %17 = vector.load %arg6[%c0_17, %c0_18] : memref<1x128xf32, #tpu.memory_space<vmem>>, vector<1x128xf32>
      %18 = vector.broadcast %17 : vector<1x128xf32> to vector<128x128xf32>
      %19 = arith.addf %16, %18 : vector<128x128xf32>
      %c0_19 = arith.constant 0 : index
      %c0_20 = arith.constant 0 : index
      %20 = memref.load %arg7[%c0_19, %c0_20] : memref<1x1xf32, #tpu.memory_space<smem>>
      %cst_21 = arith.constant 0.000000e+00 : f32
      %21 = vector.broadcast %cst_21 : f32 to vector<128x128xf32>
      %22 = arith.cmpf ogt, %19, %21 : vector<128x128xf32>
      %23 = vector.broadcast %20 : f32 to vector<128x128xf32>
      %24 = arith.mulf %23, %19 : vector<128x128xf32>
      %25 = arith.select %22, %19, %24 : vector<128x128xi1>, vector<128x128xf32>
      %c0_22 = arith.constant 0 : index
      %c0_23 = arith.constant 0 : index
      %c0_24 = arith.constant 0 : index
      %26 = vector.load %arg8[%c0_22, %c0_23, %c0_24] : memref<1x128x128xf32, #tpu.memory_space<vmem>>, vector<1x128x128xf32>
      %27 = vector.shape_cast %26 : vector<1x128x128xf32> to vector<128x128xf32>
      %28 = vector.shape_cast %25 : vector<128x128xf32> to vector<1x128x128xf32>
      tpu.vector_store %arg8[%c0_22, %c0_23, %c0_24], %28 {strides = array<i32>} : memref<1x128x128xf32, #tpu.memory_space<vmem>>, vector<1x128x128xf32>,
    } else {
    }
    return
  }
  func.func @transform_0(%arg0: i32, %arg1: i32, %arg2: i32) -> (i32, i32, i32) {
    %c0_i32 = arith.constant 0 : i32
    return %arg0, %arg1, %arg2 : i32, i32, i32
  }
  func.func @transform_1(%arg0: i32, %arg1: i32, %arg2: i32) -> (i32, i32, i32) {
    %c0_i32 = arith.constant 0 : i32
    %c0_i32_0 = arith.constant 0 : i32
    return %arg0, %arg2, %c0_i32 : i32, i32, i32
  }
  func.func @transform_2(%arg0: i32, %arg1: i32, %arg2: i32) -> (i32, i32) {
    %c0_i32 = arith.constant 0 : i32
    %c0_i32_0 = arith.constant 0 : i32
    %c0_i32_1 = arith.constant 0 : i32
    return %c0_i32, %c0_i32_0 : i32, i32
  }
  func.func @transform_3(%arg0: i32, %arg1: i32, %arg2: i32) -> (i32, i32) {
    %c0_i32 = arith.constant 0 : i32
    %c0_i32_0 = arith.constant 0 : i32
    %c0_i32_1 = arith.constant 0 : i32
    return %c0_i32, %c0_i32_0 : i32, i32
  }
  func.func @transform_4(%arg0: i32, %arg1: i32, %arg2: i32) -> (i32, i32) {
    %c0_i32 = arith.constant 0 : i32
    %c0_i32_0 = arith.constant 0 : i32
    %c0_i32_1 = arith.constant 0 : i32
    return %c0_i32, %c0_i32_0 : i32, i32
  }
  func.func @transform_5(%arg0: i32, %arg1: i32, %arg2: i32) -> (i32, i32, i32) {
    %c0_i32 = arith.constant 0 : i32
    %c0_i32_0 = arith.constant 0 : i32
    return %arg0, %arg1, %c0_i32 : i32, i32, i32
  }
}

</mosaic_0001>

<bundles_post_ra>
// kernel: tpu_custom_call.1
= control target key start
LH: loop header
LB: loop body
LE: loop exit
PB: predicated region body
PF: predicated region fallthrough
CT: control target
= control target key end

     0   :  { %s1303_s0 = inlined_call_operand.vmem [shape: f32[2,128,128], index: 0, kind: input, shape index: {}]   ;;  %s1304_s1 = inlined_call_operand.vmem [shape: f32[2,128,16], index: 1, kind: input, shape index: {}]   ;;  %s1305_s2 = inlined_call_operand.vmem [shape: f32[16,128], index: 2, kind: input, shape index: {}]   ;;  %s1306_s3 = inlined_call_operand.vmem [shape: f32[1,128], index: 3, kind: input, shape index: {}]   ;;  %s1307_s4 = inlined_call_operand.<no memory space> [shape: f32[1,1], index: 4, kind: input, shape index: {}]   ;;  %s1308_s5 = inlined_call_operand.hbm [shape: f32[2,128,128], index: 5, kind: output, shape index: {}]  }
   0x1   :  { %10 = sst [smem:[#allocation3]] %s1307_s4 }
   0x2   :  { %11 = vsyncpa [#allocation5], 0 }
   0x3   :  { %13 = vsyncpa [#allocation5 + $0x1], 0  ;;  %s1044_s20 = smov 0   ;;  %s1046_s21 = smov 0  }
   0x4   :  { %s1048_s22 = smov 0   ;;  %s1050_s23 = smov 0  }
   0x5   :  { %s1052_s24 = smov 0   ;;  %s1054_s25 = smov 0  }
   0x6 LB: > { %s801_s4 = sadd.s32 4294967295, %s1006_s25   ;;  %s802_s26 = sadd.s32 4294967294, %s1006_s25   ;;  %s1006_s25 = sphi %s1054_s25, %s19_s25   ;;  %s1002_s24 = sphi %s1052_s24, %s1315_s24   ;;  %s998_s23 = sphi %s1050_s23, %s1314_s23   ;;  %s994_s22 = sphi %s1048_s22, %s1313_s22   ;;  %s990_s21 = sphi %s1046_s21, %s1312_s21   ;;  %s986_s20 = sphi %s1044_s20, %s1311_s20  }
   0x7   : > { %s38_s27 = sadd.s32 1, %s1002_s24  ;;  %s168_s28 = sadd.s32 1, %s994_s22 }
   0x8   : > { %p40_p0 = scmp.ge.s32.totalorder %s38_s27, 2  ;;  %p178_p1 = scmp.ne.s32.totalorder %s994_s22, %s990_s21 }
   0x9   : > { %p179_p2 = scmp.eq.s32.totalorder %s801_s4, 1  ;;  %p184_p3 = scmp.ne.s32.totalorder %s990_s21, %s986_s20 }
   0xa   : > { %s1317_s27 = smov (%p40_p0, %s38_s27), 0  ;;  %p185_p5 = scmp.eq.s32.totalorder %s802_s26, 1 }
   0xb   : > { %p1084_p4 = por %p179_p2, %p178_p1  ;;  %s163_s30 = ssub.s32 %s1002_s24, %s1317_s27 }
   0xc   : > { %p805_p6 = scmp.ge.s32.totalorder %s1006_s25, 1  ;;  %p166_p7 = scmp.eq.s32.totalorder %s163_s30, 0 }
   0xd   : > { %p1091_p8 = por %p185_p5, %p184_p3  ;;  %p241_p9 = scmp.lt.s32.totalorder %s1006_s25, 3 }
   0xe   : > { %s1097_s7 = scalar_select %p166_p7, %s994_s22, %s168_s28  }
   0xf   : > { %p242_p10 = pnand %p805_p6, %p241_p9 }
  0x10   : > { %p286_p11 = scmp.lt.s32.totalorder (!%p242_p10), %s998_s23, 1  ;;  %s614_s4 = sld [smem:[#allocation3]] (!%p242_p10) }
  0x11   : > { %245 = sbr.rel (%p242_p10) target bundleno = 405 (0x195), region = 40  ;;  %s282_s26 = sand.u32 (!%p242_p10), 1, %s990_s21  }
  0x12   : > { %s834_s10 = sshll.u32 (!%p242_p10), %s998_s23, 7 }
  0x13   : > { %s694_s13 = scalar_lea.hbm (!%p242_p10), %s1308_s5, %s834_s10 }
  0x16   : > { %s1101_s8 = scalar_select %p286_p11, %s998_s23, 1  ;;  %vm313_vm0 = vcmask 130048   ;;  %v1008_v25 = vmov 0.0   ;;  %v496_v33 = vld [vmem:[%s1305_s2 + $0x8] sm:$0xff]  ;;  %v495_v34 = vld [vmem:[%s1305_s2] sm:$0xff] }
  0x17   : > { %314 = vst.msk [vmem:[#allocation2] sm:$0xff] %vm313_vm0, %v1008_v25  ;;  %563 = vmatpush.msra.mxu1 %v496_v33  ;;  %s697_s23 = sshll.u32 %s694_s13, 4  ;;  %s698_s23 = int_to_ptr.hbm [resolvable:$true] %s697_s23 }
  0x18   : > { %s832_s9 = sshll.u32 %s1101_s8, 7  ;;  %315 = vst.msk [vmem:[#allocation2 + $0x8] sm:$0xff] %vm313_vm0, %v1008_v25  ;;  %s806_s8 = sshll.u32 %s282_s26, 7 }
  0x19   : > { %s1109_s12 = scalar_lea.vmem %s1304_s1, %s832_s9  ;;  %s1131_s15 = scalar_lea.vmem %s1303_s0, %s832_s9  ;;  %316 = vst.msk [vmem:[#allocation2 + $0x10] sm:$0xff] %vm313_vm0, %v1008_v25  ;;  %564 = vmatpush.msra.mxu1 %v495_v34 }
  0x1a   : > { %v377_v0 = vld [vmem:[%s1109_s12 + $0x78] sm:$0xff]  ;;  %v376_v1 = vld [vmem:[%s1109_s12 + $0x70] sm:$0xff]  ;;  %v375_v2 = vld [vmem:[%s1109_s12 + $0x68] sm:$0xff]  ;;  %317 = vst.msk [vmem:[#allocation2 + $0x18] sm:$0xff] %vm313_vm0, %v1008_v25  ;;  %s1216_s9 = scalar_lea.vmem [#allocation4], %s806_s8  ;;  %s942_s16 = sshra.s32 %s698_s23, 4  ;;  %s943_s16 = int_to_ptr.hbm [resolvable:$true] %s942_s16 }
  0x1b   : > { %378 = vmatpush.msra.mxu0 %v377_v0  ;;  %835 = vmatpush.msra.mxu2 %v377_v0  ;;  %v374_v3 = vld [vmem:[%s1109_s12 + $0x60] sm:$0xff]  ;;  %v373_v4 = vld [vmem:[%s1109_s12 + $0x58] sm:$0xff]  ;;  %v372_v5 = vld [vmem:[%s1109_s12 + $0x50] sm:$0xff]  ;;  %318 = vst.msk [vmem:[#allocation2 + $0x20] sm:$0xff] %vm313_vm0, %v1008_v25  ;;  %s695_s14 = sshll.u32 %s1216_s9, 4  ;;  %s944_s17 = scalar_lea.hbm %s943_s16, 128  ;;  %s696_s14 = int_to_ptr.vmem [resolvable:$true] %s695_s14 }
  0x1c   : > { %836 = vmatpush.msra.mxu3 %v377_v0  ;;  %v371_v6 = vld [vmem:[%s1109_s12 + $0x48] sm:$0xff]  ;;  %v370_v7 = vld [vmem:[%s1109_s12 + $0x40] sm:$0xff]  ;;  %v369_v8 = vld [vmem:[%s1109_s12 + $0x38] sm:$0xff]  ;;  %319 = vst.msk [vmem:[#allocation2 + $0x28] sm:$0xff] %vm313_vm0, %v1008_v25  ;;  %p945_p12 = scmp.ne.s32.totalorder %s943_s16, %s944_s17  ;;  %p949_p1 = scmp.lt.s32.totalorder %s943_s16, %s1308_s5 }
  0x1d   : > { %379 = vmatpush.msra.mxu0 %v376_v1  ;;  %837 = vmatpush.msra.mxu2 %v376_v1  ;;  %v368_v9 = vld [vmem:[%s1109_s12 + $0x30] sm:$0xff]  ;;  %v367_v10 = vld [vmem:[%s1109_s12 + $0x28] sm:$0xff]  ;;  %v366_v11 = vld [vmem:[%s1109_s12 + $0x20] sm:$0xff]  ;;  %320 = vst.msk [vmem:[#allocation2 + $0x30] sm:$0xff] %vm313_vm0, %v1008_v25 }
  0x1e   : > { %838 = vmatpush.msra.mxu3 %v376_v1  ;;  %v365_v12 = vld [vmem:[%s1109_s12 + $0x18] sm:$0xff]  ;;  %v364_v13 = vld [vmem:[%s1109_s12 + $0x10] sm:$0xff]  ;;  %v363_v14 = vld [vmem:[%s1109_s12 + $0x8] sm:$0xff]  ;;  %321 = vst.msk [vmem:[#allocation2 + $0x38] sm:$0xff] %vm313_vm0, %v1008_v25  ;;  %p946_p13 = pnand %p945_p12, %p1084_p4 }
  0x1f   : > { %380 = vmatpush.msra.mxu0 %v375_v2  ;;  %839 = vmatpush.msra.mxu2 %v375_v2  ;;  %v362_v15 = vld [vmem:[%s1109_s12] sm:$0xff]  ;;  %v353_v17 = vld [vmem:[%s1131_s15 + $0x38] sm:$0xff]  ;;  %v347_v18 = vld [vmem:[%s1131_s15 + $0x8] sm:$0xff]  ;;  %322 = vst.msk [vmem:[#allocation2 + $0x40] sm:$0xff] %vm313_vm0, %v1008_v25 }
  0x20   : > { %840 = vmatpush.msra.mxu3 %v375_v2  ;;  %v346_v16 = vld [vmem:[%s1131_s15] sm:$0xff]  ;;  %v348_v20 = vld [vmem:[%s1131_s15 + $0x10] sm:$0xff]  ;;  %v355_v21 = vld [vmem:[%s1131_s15 + $0x48] sm:$0xff]  ;;  %323 = vst.msk [vmem:[#allocation2 + $0x48] sm:$0xff] %vm313_vm0, %v1008_v25  ;;  %p947_p0 = pneg %p946_p13 }
  0x21   : > { %381 = vmatpush.msra.mxu0 %v374_v3  ;;  %841 = vmatpush.msra.mxu2 %v374_v3  ;;  %v354_v19 = vld [vmem:[%s1131_s15 + $0x40] sm:$0xff]  ;;  %v349_v22 = vld [vmem:[%s1131_s15 + $0x18] sm:$0xff]  ;;  %v356_v23 = vld [vmem:[%s1131_s15 + $0x50] sm:$0xff]  ;;  %324 = vst.msk [vmem:[#allocation2 + $0x50] sm:$0xff] %vm313_vm0, %v1008_v25 }
  0x22   : > { %842 = vmatpush.msra.mxu3 %v374_v3  ;;  %v361_v24 = vld [vmem:[%s1131_s15 + $0x78] sm:$0xff]  ;;  %v350_v26 = vld [vmem:[%s1131_s15 + $0x20] sm:$0xff]  ;;  %325 = vst.msk [vmem:[#allocation2 + $0x58] sm:$0xff] %vm313_vm0, %v1008_v25  ;;  %v351_v28 = vld [vmem:[%s1131_s15 + $0x28] sm:$0xff] }
  0x23   : > { %382 = vmatpush.msra.mxu0 %v373_v4  ;;  %843 = vmatpush.msra.mxu2 %v373_v4  ;;  %v357_v27 = vld [vmem:[%s1131_s15 + $0x58] sm:$0xff]  ;;  %v358_v29 = vld [vmem:[%s1131_s15 + $0x60] sm:$0xff]  ;;  %326 = vst.msk [vmem:[#allocation2 + $0x60] sm:$0xff] %vm313_vm0, %v1008_v25  ;;  %v352_v30 = vld [vmem:[%s1131_s15 + $0x30] sm:$0xff] }
  0x24   : > { %844 = vmatpush.msra.mxu3 %v373_v4  ;;  %327 = vst.msk [vmem:[#allocation2 + $0x68] sm:$0xff] %vm313_vm0, %v1008_v25  ;;  %v359_v31 = vld [vmem:[%s1131_s15 + $0x68] sm:$0xff]  ;;  %v360_v32 = vld [vmem:[%s1131_s15 + $0x70] sm:$0xff]  ;;  %v330_v35 = vld [vmem:[#allocation2] sm:$0xff]  ;;  %s681_s15 = scalar_lea.sflag [#allocation5], %s282_s26 }
  0x25   : > { %383 = vmatpush.msra.mxu0 %v372_v5  ;;  %845 = vmatpush.msra.mxu2 %v372_v5  ;;  %328 = vst.msk [vmem:[#allocation2 + $0x70] sm:$0xff] %vm313_vm0, %v1008_v25  ;;  %v337_v38 = vld [vmem:[#allocation2 + $0x38] sm:$0xff]  ;;  %v331_v40 = vld [vmem:[#allocation2 + $0x8] sm:$0xff]  ;;  %v332_v47 = vld [vmem:[#allocation2 + $0x10] sm:$0xff] }
  0x26   : > { %846 = vmatpush.msra.mxu3 %v372_v5  ;;  %329 = vst.msk [vmem:[#allocation2 + $0x78] sm:$0xff] %vm313_vm0, %v1008_v25  ;;  %v338_v45 = vld [vmem:[#allocation2 + $0x40] sm:$0xff]  ;;  %v333_v54 = vld [vmem:[#allocation2 + $0x18] sm:$0xff] }
  0x27   : > { %384 = vmatpush.msra.mxu0 %v371_v6  ;;  %847 = vmatpush.msra.mxu2 %v371_v6  ;;  %v339_v52 = vld [vmem:[#allocation2 + $0x48] sm:$0xff]  ;;  %v334_v61 = vld [vmem:[#allocation2 + $0x20] sm:$0xff] }
  0x28   : > { %848 = vmatpush.msra.mxu3 %v371_v6  ;;  %v340_v59 = vld [vmem:[#allocation2 + $0x50] sm:$0xff] }
  0x29   : > { %385 = vmatpush.msra.mxu0 %v370_v7  ;;  %849 = vmatpush.msra.mxu2 %v370_v7  ;;  %v341_v4 = vld [vmem:[#allocation2 + $0x58] sm:$0xff] }
  0x2a   : > { %850 = vmatpush.msra.mxu3 %v370_v7  ;;  %v335_v7 = vld [vmem:[#allocation2 + $0x28] sm:$0xff] }
  0x2b   : > { %386 = vmatpush.msra.mxu0 %v369_v8  ;;  %851 = vmatpush.msra.mxu2 %v369_v8 }
  0x2c   : > { %852 = vmatpush.msra.mxu3 %v369_v8 }
  0x2d   : > { %387 = vmatpush.msra.mxu0 %v368_v9  ;;  %853 = vmatpush.msra.mxu2 %v368_v9  ;;  %v345_v2 = vld [vmem:[#allocation2 + $0x78] sm:$0xff] }
  0x2e   : > { %854 = vmatpush.msra.mxu3 %v368_v9 }
  0x2f   : > { %388 = vmatpush.msra.mxu0 %v367_v10  ;;  %855 = vmatpush.msra.mxu2 %v367_v10 }
  0x30   : > { %856 = vmatpush.msra.mxu3 %v367_v10 }
  0x31   : > { %389 = vmatpush.msra.mxu0 %v366_v11  ;;  %857 = vmatpush.msra.mxu2 %v366_v11 }
  0x32   : > { %858 = vmatpush.msra.mxu3 %v366_v11 }
  0x33   : > { %390 = vmatpush.msra.mxu0 %v365_v12  ;;  %859 = vmatpush.msra.mxu2 %v365_v12 }
  0x34   : > { %860 = vmatpush.msra.mxu3 %v365_v12 }
  0x35   : > { %391 = vmatpush.msra.mxu0 %v364_v13  ;;  %861 = vmatpush.msra.mxu2 %v364_v13 }
  0x36   : > { %862 = vmatpush.msra.mxu3 %v364_v13  ;;  %v342_v13 = vld [vmem:[#allocation2 + $0x60] sm:$0xff] }
  0x37   : > { %392 = vmatpush.msra.mxu0 %v363_v14  ;;  %863 = vmatpush.msra.mxu2 %v363_v14 }
  0x38   : > { %864 = vmatpush.msra.mxu3 %v363_v14 }
  0x39   : > { %393 = vmatpush.msra.mxu0 %v362_v15  ;;  %865 = vmatpush.msra.mxu2 %v362_v15 }
  0x3a   : > { %394 = vmatmul.f32.vlgmr.msra.gmra.mxu0 %v346_v16  ;;  %415 = vmatmul.f32.vlgmr.msra.gmra.mxu2 %v353_v17 }
  0x3b   : > { %866 = vmatpush.msra.mxu3 %v362_v15  ;;  %v336_v15 = vld [vmem:[#allocation2 + $0x30] sm:$0xff] }
  0x3c   : > { %439 = vmatmul.f32.vlgmr.msra.gmra.mxu3 %v361_v24 }
  0x3d   : > { %867 = vmatpush.msrb.mxu3 %v496_v33 }
  0x3f   : > { %868 = vmatpush.msrb.mxu3 %v495_v34 }
  0x42   : > { %397 = vmatmul.f32.gmra.mxu0 %v347_v18  ;;  %418 = vmatmul.f32.gmra.mxu2 %v354_v19 }
  0x4a   : > { %400 = vmatmul.f32.gmra.mxu0 %v348_v20  ;;  %421 = vmatmul.f32.gmra.mxu2 %v355_v21  ;;  %v343_v21 = vld [vmem:[#allocation2 + $0x68] sm:$0xff] }
  0x52   : > { %403 = vmatmul.f32.gmra.mxu0 %v349_v22  ;;  %424 = vmatmul.f32.gmra.mxu2 %v356_v23 }
  0x5a   : > { %406 = vmatmul.f32.gmra.mxu0 %v350_v26  ;;  %427 = vmatmul.f32.gmra.mxu2 %v357_v27  ;;  %v344_v26 = vld [vmem:[#allocation2 + $0x70] sm:$0xff] }
  0x62   : > { %409 = vmatmul.f32.gmra.mxu0 %v351_v28  ;;  %430 = vmatmul.f32.gmra.mxu2 %v358_v29 }
  0x6a   : > { %412 = vmatmul.f32.gmra.mxu0 %v352_v30  ;;  %433 = vmatmul.f32.gmra.mxu2 %v359_v31 }
  0x72   : > { %436 = vmatmul.f32.gmra.mxu2 %v360_v32 }
  0xb7   : > { %v395_v36 = vpop.f32.mrf.mxu0 }
  0xb8   : > { %v443_v37 = vadd.f32 %v395_v36, %v330_v35  ;;  %v1208_v35 = vld [vmem:[%s1306_s3] ss:$0 sm:$0xff] }
  0xba   : > { %460 = vst.msk [vmem:[#allocation2] sm:$0xff] %vm313_vm0, %v443_v37  ;;  %v1212_v37 = vstv %s614_s4  ;;  %s948_s4 = scalar_lea.hbm %s1308_s5, 256 }
  0xbb   : > { %p950_p2 = scmp.lt.s32.totalorder %s948_s4, %s944_s17 }
  0xbd   : > { %v416_v39 = vpop.f32.mrf.mxu2  ;;  %p951_p3 = por %p950_p2, %p949_p1 }
  0xbe   : > { %v450_v41 = vadd.f32 %v416_v39, %v337_v38 }
  0xbf   : > { %v398_v42 = vpop.f32.mrf.mxu0  ;;  %v440_v3 = vpop.f32.mrf.mxu3  ;;  %p952_p5 = pnand %p951_p3, %p947_p0 }
  0xc0   : > { %467 = vst.msk [vmem:[#allocation2 + $0x38] sm:$0xff] %vm313_vm0, %v450_v41  ;;  %v444_v43 = vadd.f32 %v398_v42, %v331_v40  ;;  %v458_v5 = vadd.f32 %v440_v3, %v345_v2 }
  0xc1   : > { %v479_v44 = vld [vmem:[#allocation2] sm:$0xff] }
  0xc2   : > { %461 = vst.msk [vmem:[#allocation2 + $0x8] sm:$0xff] %vm313_vm0, %v444_v43  ;;  %811 = vmatmul.msk.f32.vlgmr.msra.gmra.mxu1 %vm313_vm0, %v479_v44 }
  0xc3   : > { %475 = vst.msk [vmem:[#allocation2 + $0x78] sm:$0xff] %vm313_vm0, %v458_v5 }
  0xc5   : > { %v419_v46 = vpop.f32.mrf.mxu2 }
  0xc6   : > { %v451_v48 = vadd.f32 %v419_v46, %v338_v45 }
  0xc7   : > { %v401_v49 = vpop.f32.mrf.mxu0  ;;  %v486_v30 = vld [vmem:[#allocation2 + $0x38] sm:$0xff] }
  0xc8   : > { %468 = vst.msk [vmem:[#allocation2 + $0x40] sm:$0xff] %vm313_vm0, %v451_v48  ;;  %v445_v50 = vadd.f32 %v401_v49, %v332_v47 }
  0xc9   : > { %v480_v51 = vld [vmem:[#allocation2 + $0x8] sm:$0xff] }
  0xca   : > { %462 = vst.msk [vmem:[#allocation2 + $0x10] sm:$0xff] %vm313_vm0, %v445_v50  ;;  %812 = vmatmul.msk.f32.gmra.mxu1 %vm313_vm0, %v480_v51  ;;  %v494_v33 = vld [vmem:[#allocation2 + $0x78] sm:$0xff] }
  0xcd   : > { %v422_v53 = vpop.f32.mrf.mxu2 }
  0xce   : > { %v452_v55 = vadd.f32 %v422_v53, %v339_v52 }
  0xcf   : > { %v404_v56 = vpop.f32.mrf.mxu0  ;;  %v487_v32 = vld [vmem:[#allocation2 + $0x40] sm:$0xff] }
  0xd0   : > { %469 = vst.msk [vmem:[#allocation2 + $0x48] sm:$0xff] %vm313_vm0, %v452_v55  ;;  %v446_v57 = vadd.f32 %v404_v56, %v333_v54 }
  0xd1   : > { %v481_v58 = vld [vmem:[#allocation2 + $0x10] sm:$0xff] }
  0xd2   : > { %463 = vst.msk [vmem:[#allocation2 + $0x18] sm:$0xff] %vm313_vm0, %v446_v57  ;;  %813 = vmatmul.msk.f32.gmra.mxu1 %vm313_vm0, %v481_v58 }
  0xd5   : > { %v425_v60 = vpop.f32.mrf.mxu2 }
  0xd6   : > { %v453_v62 = vadd.f32 %v425_v60, %v340_v59 }
  0xd7   : > { %v407_v63 = vpop.f32.mrf.mxu0  ;;  %v488_v34 = vld [vmem:[#allocation2 + $0x48] sm:$0xff] }
  0xd8   : > { %470 = vst.msk [vmem:[#allocation2 + $0x50] sm:$0xff] %vm313_vm0, %v453_v62  ;;  %v447_v0 = vadd.f32 %v407_v63, %v334_v61 }
  0xd9   : > { %v482_v1 = vld [vmem:[#allocation2 + $0x18] sm:$0xff] }
  0xda   : > { %464 = vst.msk [vmem:[#allocation2 + $0x20] sm:$0xff] %vm313_vm0, %v447_v0  ;;  %814 = vmatmul.msk.f32.gmra.mxu1 %vm313_vm0, %v482_v1 }
  0xdd   : > { %v428_v6 = vpop.f32.mrf.mxu2 }
  0xde   : > { %v454_v8 = vadd.f32 %v428_v6, %v341_v4 }
  0xdf   : > { %v410_v9 = vpop.f32.mrf.mxu0  ;;  %v489_v10 = vld [vmem:[#allocation2 + $0x50] sm:$0xff] }
  0xe0   : > { %471 = vst.msk [vmem:[#allocation2 + $0x58] sm:$0xff] %vm313_vm0, %v454_v8  ;;  %v448_v11 = vadd.f32 %v410_v9, %v335_v7  ;;  %821 = vmatmul.msk.f32.vlgmr.msrb.gmra.mxu3 %vm313_vm0, %v489_v10 }
  0xe1   : > { %v483_v12 = vld [vmem:[#allocation2 + $0x20] sm:$0xff] }
  0xe2   : > { %465 = vst.msk [vmem:[#allocation2 + $0x28] sm:$0xff] %vm313_vm0, %v448_v11  ;;  %815 = vmatmul.msk.f32.gmra.mxu1 %vm313_vm0, %v483_v12 }
  0xe5   : > { %v431_v14 = vpop.f32.mrf.mxu2 }
  0xe6   : > { %v455_v16 = vadd.f32 %v431_v14, %v342_v13 }
  0xe7   : > { %v413_v17 = vpop.f32.mrf.mxu0  ;;  %v490_v18 = vld [vmem:[#allocation2 + $0x58] sm:$0xff] }
  0xe8   : > { %472 = vst.msk [vmem:[#allocation2 + $0x60] sm:$0xff] %vm313_vm0, %v455_v16  ;;  %v449_v19 = vadd.f32 %v413_v17, %v336_v15  ;;  %822 = vmatmul.msk.f32.gmra.mxu3 %vm313_vm0, %v490_v18 }
  0xe9   : > { %v484_v20 = vld [vmem:[#allocation2 + $0x28] sm:$0xff] }
  0xea   : > { %466 = vst.msk [vmem:[#allocation2 + $0x30] sm:$0xff] %vm313_vm0, %v449_v19  ;;  %816 = vmatmul.msk.f32.gmra.mxu1 %vm313_vm0, %v484_v20 }
  0xed   : > { %v434_v22 = vpop.f32.mrf.mxu2 }
  0xee   : > { %v456_v23 = vadd.f32 %v434_v22, %v343_v21 }
  0xef   : > { %v491_v24 = vld [vmem:[#allocation2 + $0x60] sm:$0xff] }
  0xf0   : > { %473 = vst.msk [vmem:[#allocation2 + $0x68] sm:$0xff] %vm313_vm0, %v456_v23  ;;  %823 = vmatmul.msk.f32.gmra.mxu3 %vm313_vm0, %v491_v24 }
  0xf1   : > { %v485_v25 = vld [vmem:[#allocation2 + $0x30] sm:$0xff] }
  0xf2   : > { %817 = vmatmul.msk.f32.gmra.mxu1 %vm313_vm0, %v485_v25 }
  0xf5   : > { %v437_v27 = vpop.f32.mrf.mxu2 }
  0xf6   : > { %v457_v28 = vadd.f32 %v437_v27, %v344_v26 }
  0xf7   : > { %v492_v29 = vld [vmem:[#allocation2 + $0x68] sm:$0xff] }
  0xf8   : > { %474 = vst.msk [vmem:[#allocation2 + $0x70] sm:$0xff] %vm313_vm0, %v457_v28  ;;  %824 = vmatmul.msk.f32.gmra.mxu3 %vm313_vm0, %v492_v29 }
  0xfa   : > { %818 = vmatmul.msk.f32.gmra.mxu1 %vm313_vm0, %v486_v30 }
  0xff   : > { %v493_v31 = vld [vmem:[#allocation2 + $0x70] sm:$0xff] }
 0x100   : > { %825 = vmatmul.msk.f32.gmra.mxu3 %vm313_vm0, %v493_v31 }
 0x102   : > { %819 = vmatmul.msk.f32.gmra.mxu1 %vm313_vm0, %v487_v32 }
 0x108   : > { %826 = vmatmul.msk.f32.gmra.mxu3 %vm313_vm0, %v494_v33 }
 0x10a   : > { %820 = vmatmul.msk.f32.gmra.mxu1 %vm313_vm0, %v488_v34 }
 0x13f   : > { %v566_v36 = vpop.f32.mrf.mxu1 }
 0x140   : > { %v567_v38 = vadd.f32 %v1208_v35, %v566_v36 }
 0x142   : > { %vm615_vm1 = vcmp.gt.f32.partialorder %v567_v38, 0.0  ;;  %v632_v39 = vmul.f32 %v1212_v37, %v567_v38 }
 0x144   : > { %v648_v40 = vsel %vm615_vm1, %v567_v38, %v632_v39 }
 0x145   : > { %664 = vst [vmem:[%s1216_s9] sm:$0xff] %v648_v40 }
 0x147   : > { %v569_v41 = vpop.f32.mrf.mxu1 }
 0x148   : > { %v570_v42 = vadd.f32 %v1208_v35, %v569_v41 }
 0x14a   : > { %vm616_vm2 = vcmp.gt.f32.partialorder %v570_v42, 0.0  ;;  %v633_v43 = vmul.f32 %v1212_v37, %v570_v42 }
 0x14c   : > { %v649_v44 = vsel %vm616_vm2, %v570_v42, %v633_v43 }
 0x14d   : > { %665 = vst [vmem:[%s1216_s9 + $0x8] sm:$0xff] %v649_v44 }
 0x14f   : > { %v572_v45 = vpop.f32.mrf.mxu1 }
 0x150   : > { %v573_v46 = vadd.f32 %v1208_v35, %v572_v45 }
 0x152   : > { %vm617_vm3 = vcmp.gt.f32.partialorder %v573_v46, 0.0  ;;  %v634_v47 = vmul.f32 %v1212_v37, %v573_v46 }
 0x154   : > { %v650_v48 = vsel %vm617_vm3, %v573_v46, %v634_v47 }
 0x155   : > { %666 = vst [vmem:[%s1216_s9 + $0x10] sm:$0xff] %v650_v48 }
 0x157   : > { %v575_v49 = vpop.f32.mrf.mxu1 }
 0x158   : > { %v576_v50 = vadd.f32 %v1208_v35, %v575_v49 }
 0x15a   : > { %vm618_vm4 = vcmp.gt.f32.partialorder %v576_v50, 0.0  ;;  %v635_v51 = vmul.f32 %v1212_v37, %v576_v50 }
 0x15c   : > { %v651_v52 = vsel %vm618_vm4, %v576_v50, %v635_v51 }
 0x15d   : > { %667 = vst [vmem:[%s1216_s9 + $0x18] sm:$0xff] %v651_v52 }
 0x15f   : > { %v578_v53 = vpop.f32.mrf.mxu1 }
 0x160   : > { %v579_v54 = vadd.f32 %v1208_v35, %v578_v53 }
 0x162   : > { %vm619_vm5 = vcmp.gt.f32.partialorder %v579_v54, 0.0  ;;  %v636_v55 = vmul.f32 %v1212_v37, %v579_v54 }
 0x163   : > { %v596_v56 = vpop.f32.mrf.mxu3 }
 0x164   : > { %v652_v57 = vsel %vm619_vm5, %v579_v54, %v636_v55  ;;  %v597_v58 = vadd.f32 %v1208_v35, %v596_v56 }
 0x165   : > { %668 = vst [vmem:[%s1216_s9 + $0x20] sm:$0xff] %v652_v57 }
 0x166   : > { %vm625_vm6 = vcmp.gt.f32.partialorder %v597_v58, 0.0  ;;  %v642_v59 = vmul.f32 %v1212_v37, %v597_v58 }
 0x167   : > { %v581_v60 = vpop.f32.mrf.mxu1 }
 0x168   : > { %v658_v61 = vsel %vm625_vm6, %v597_v58, %v642_v59  ;;  %v582_v62 = vadd.f32 %v1208_v35, %v581_v60 }
 0x169   : > { %674 = vst [vmem:[%s1216_s9 + $0x50] sm:$0xff] %v658_v61 }
 0x16a   : > { %vm620_vm7 = vcmp.gt.f32.partialorder %v582_v62, 0.0  ;;  %v637_v63 = vmul.f32 %v1212_v37, %v582_v62 }
 0x16b   : > { %v599_v0 = vpop.f32.mrf.mxu3 }
 0x16c   : > { %v653_v1 = vsel %vm620_vm7, %v582_v62, %v637_v63  ;;  %v600_v2 = vadd.f32 %v1208_v35, %v599_v0 }
 0x16d   : > { %669 = vst [vmem:[%s1216_s9 + $0x28] sm:$0xff] %v653_v1 }
 0x16e   : > { %vm626_vm8 = vcmp.gt.f32.partialorder %v600_v2, 0.0  ;;  %v643_v3 = vmul.f32 %v1212_v37, %v600_v2 }
 0x16f   : > { %v584_v4 = vpop.f32.mrf.mxu1 }
 0x170   : > { %v659_v5 = vsel %vm626_vm8, %v600_v2, %v643_v3  ;;  %v585_v6 = vadd.f32 %v1208_v35, %v584_v4 }
 0x171   : > { %675 = vst [vmem:[%s1216_s9 + $0x58] sm:$0xff] %v659_v5 }
 0x172   : > { %vm621_vm9 = vcmp.gt.f32.partialorder %v585_v6, 0.0  ;;  %v638_v7 = vmul.f32 %v1212_v37, %v585_v6 }
 0x173   : > { %v602_v8 = vpop.f32.mrf.mxu3 }
 0x174   : > { %v654_v9 = vsel %vm621_vm9, %v585_v6, %v638_v7  ;;  %v603_v10 = vadd.f32 %v1208_v35, %v602_v8 }
 0x175   : > { %670 = vst [vmem:[%s1216_s9 + $0x30] sm:$0xff] %v654_v9 }
 0x176   : > { %vm627_vm10 = vcmp.gt.f32.partialorder %v603_v10, 0.0  ;;  %v644_v11 = vmul.f32 %v1212_v37, %v603_v10 }
 0x177   : > { %v587_v12 = vpop.f32.mrf.mxu1 }
 0x178   : > { %v660_v13 = vsel %vm627_vm10, %v603_v10, %v644_v11  ;;  %v588_v14 = vadd.f32 %v1208_v35, %v587_v12 }
 0x179   : > { %676 = vst [vmem:[%s1216_s9 + $0x60] sm:$0xff] %v660_v13 }
 0x17a   : > { %vm622_vm11 = vcmp.gt.f32.partialorder %v588_v14, 0.0  ;;  %v639_v15 = vmul.f32 %v1212_v37, %v588_v14 }
 0x17b   : > { %v605_v16 = vpop.f32.mrf.mxu3 }
 0x17c   : > { %v655_v17 = vsel %vm622_vm11, %v588_v14, %v639_v15  ;;  %v606_v18 = vadd.f32 %v1208_v35, %v605_v16 }
 0x17d   : > { %671 = vst [vmem:[%s1216_s9 + $0x38] sm:$0xff] %v655_v17 }
 0x17e   : > { %vm628_vm12 = vcmp.gt.f32.partialorder %v606_v18, 0.0  ;;  %v645_v19 = vmul.f32 %v1212_v37, %v606_v18 }
 0x17f   : > { %v590_v20 = vpop.f32.mrf.mxu1 }
 0x180   : > { %v661_v21 = vsel %vm628_vm12, %v606_v18, %v645_v19  ;;  %v591_v22 = vadd.f32 %v1208_v35, %v590_v20 }
 0x181   : > { %677 = vst [vmem:[%s1216_s9 + $0x68] sm:$0xff] %v661_v21 }
 0x182   : > { %vm623_vm13 = vcmp.gt.f32.partialorder %v591_v22, 0.0  ;;  %v640_v23 = vmul.f32 %v1212_v37, %v591_v22 }
 0x183   : > { %v608_v24 = vpop.f32.mrf.mxu3 }
 0x184   : > { %v656_v25 = vsel %vm623_vm13, %v591_v22, %v640_v23  ;;  %v609_v26 = vadd.f32 %v1208_v35, %v608_v24 }
 0x185   : > { %672 = vst [vmem:[%s1216_s9 + $0x40] sm:$0xff] %v656_v25 }
 0x186   : > { %vm629_vm14 = vcmp.gt.f32.partialorder %v609_v26, 0.0  ;;  %v646_v27 = vmul.f32 %v1212_v37, %v609_v26 }
 0x187   : > { %v593_v28 = vpop.f32.mrf.mxu1 }
 0x188   : > { %v662_v29 = vsel %vm629_vm14, %v609_v26, %v646_v27  ;;  %v594_v30 = vadd.f32 %v1208_v35, %v593_v28 }
 0x189   : > { %678 = vst [vmem:[%s1216_s9 + $0x70] sm:$0xff] %v662_v29 }
 0x18a   : > { %vm624_vm15 = vcmp.gt.f32.partialorder %v594_v30, 0.0  ;;  %v641_v31 = vmul.f32 %v1212_v37, %v594_v30 }
 0x18b   : > { %v611_v32 = vpop.f32.mrf.mxu3 }
 0x18c   : > { %v657_v33 = vsel %vm624_vm15, %v594_v30, %v641_v31  ;;  %v612_v34 = vadd.f32 %v1208_v35, %v611_v32 }
 0x18d   : > { %673 = vst [vmem:[%s1216_s9 + $0x48] sm:$0xff] %v657_v33 }
 0x18e   : > { %vm630_vm0 = vcmp.gt.f32.partialorder %v612_v34, 0.0  ;;  %v647_v36 = vmul.f32 %v1212_v37, %v612_v34 }
 0x190   : > { %v663_v38 = vsel %vm630_vm0, %v612_v34, %v647_v36 }
 0x191   : > { %679 = vst [vmem:[%s1216_s9 + $0x78] sm:$0xff] %v663_v38 }
 0x192   : > { %955 = shalt.err (!%p952_p5)
}
 0x193   : > { %s1009_s26 = smov 128   ;;  %s1010_s8 = smov 8  }
 0x194   : > { %869 = dma.vmem_to_hbm [thread:$0]  (%p1084_p4), %s696_s14, 2048, %s698_s23, %s681_s15, %s1009_s26, %s1009_s26, %s1010_s8  }
 0x195 PF: > { %p875_p6 = scmp.ge.s32.totalorder %s1006_s25, 2  ;;  %s712_s9 = sand.u32 1, %s986_s20  }
 0x196   : > { %s713_s10 = scalar_lea.sflag [#allocation5], %s712_s9 }
 0x197   : > { %p872_p7 = pnand %p875_p6, %p1091_p8 }
 0x199   : > { %p873_p9 = pneg %p872_p7 }
 0x19b   : > { %981 = dma.done.wait (%p873_p9), %s713_s10, 2048  }
 0x19c   : > { %983 = vsyncadd (%p873_p9), %s713_s10, 4294965248  ;;  %s19_s25 = sadd.s32 1, %s1006_s25   ;;  %s1311_s20 = smov %s990_s21 }
 0x19d   : > { %p16_p10 = scmp.ge.s32.totalorder %s19_s25, 4   ;;  %s1312_s21 = smov %s994_s22 }
 0x19e   : > { %s1313_s22 = smov %s1097_s7  ;;  %s1314_s23 = smov %s1002_s24 }
 0x19f   : > { %s1315_s24 = smov %s1317_s27  ;;  %18 = sbr.rel (!%p16_p10) target bundleno = 6 (0x6), region = 86 }
 0x1a4   :  { %719 = vsyncpa [#allocation5], 1 }
 0x1a5   :  { %721 = vsyncpa [#allocation5 + $0x1], 1 }

</bundles_post_ra>
